<compile_context>
chip_gen: v7x
topology: tpu7x:2x2x1
jax: 0.10.0
libtpu: 0.0.40
codegen_flags: <defaults>
</compile_context>

<pallas_src>
import functools

import jax
import jax.numpy as jnp
from jax.experimental import pallas as pl
from jax.experimental.pallas import tpu as pltpu


def _round_up(x, m):
    return -(-x // m) * m


# ----------------------------- kernel --------------------------------------- #

def _make_mlp_kernel(num_hidden, batch, in_dim):
    """Fused MLP kernel for a static number of hidden layers.

    Refs:
      x_ref : (batch, in_dim)            f32
      w_ref : (num_hidden+1, D, D)       f32  weights, (in, out), zero-padded
      v_ref : (rows_pad, D)              f32  rows [2l]=gamma_l, [2l+1]=beta_l,
                                               row [2*num_hidden]=final bias
      o_ref : (batch, D)                 f32  lane-dense output (cols >= num_cls are 0)
    """
    inv_b = 1.0 / float(batch)

    def kernel(x_ref, w_ref, v_ref, o_ref):
        h = x_ref[...]                                  # (B, in_dim) f32

        for li in range(num_hidden + 1):
            w = w_ref[li]                               # (D, D)
            if li == 0 and in_dim < w.shape[0]:
                w = w[:in_dim, :]                       # static slice: real input rows
            y = jnp.dot(h, w, preferred_element_type=jnp.float32)   # (B, D)

            if li < num_hidden:
                # BatchNorm1d (batch stats, biased var) -- one-pass statistics.
                mean = jnp.sum(y, axis=0, keepdims=True) * inv_b     # (1, D)
                ex2 = jnp.sum(y * y, axis=0, keepdims=True) * inv_b  # (1, D)
                var = ex2 - mean * mean
                gamma = v_ref[pl.ds(2 * li, 1), :]                   # (1, D)
                beta = v_ref[pl.ds(2 * li + 1, 1), :]                # (1, D)
                scale = gamma * jax.lax.rsqrt(var + 1e-5)
                shift = beta - mean * scale
                # fused BN + ReLU
                h = jnp.maximum(y * scale + shift, 0.0)
            else:
                b_f = v_ref[pl.ds(2 * num_hidden, 1), :]             # (1, D)
                o_ref[...] = (y + b_f).astype(o_ref.dtype)

    return kernel


# ----------------------------- wrapper -------------------------------------- #

@functools.partial(jax.jit, static_argnames=("num_cls",))
def dnn_classifier_forward(x, w_buf, v_buf, *, num_cls):
    """x: (batch, input_dim) f32 -> logits (batch, num_cls) f32."""
    batch, in_dim = x.shape
    num_layers, d_pad, _ = w_buf.shape
    num_hidden = num_layers - 1

    vmem = pl.BlockSpec(memory_space=pltpu.MemorySpace.VMEM)
    kernel = _make_mlp_kernel(num_hidden, batch, in_dim)

    out_pad = pl.pallas_call(
        kernel,
        out_shape=jax.ShapeDtypeStruct((batch, d_pad), jnp.float32),
        in_specs=[vmem, vmem, vmem],
        out_specs=vmem,
    )(x, w_buf, v_buf)

    return out_pad[:, :num_cls]


# ----------------------------- params --------------------------------------- #

def init_raw_params(key, input_dim, num_cls, hid_dims):
    """Deterministic init matching nn.Linear shapes (W: (out,in), b: (out,))
    and BatchNorm1d affine params (gamma=1, beta=0)."""
    dims = [input_dim] + list(hid_dims) + [num_cls]
    raw = []
    n_layers = len(dims) - 1
    for li, (in_dim, out_dim) in enumerate(zip(dims, dims[1:])):
        key, kw, kb = jax.random.split(key, 3)
        bound = 1.0 / float(in_dim) ** 0.5
        w = jax.random.uniform(kw, (out_dim, in_dim), jnp.float32, -bound, bound)
        b = jax.random.uniform(kb, (out_dim,), jnp.float32, -bound, bound)
        has_bn = li != n_layers - 1
        layer = dict(w=w, b=b, bn=has_bn)
        if has_bn:
            layer["gamma"] = jnp.ones((out_dim,), jnp.float32)
            layer["beta"] = jnp.zeros((out_dim,), jnp.float32)
        raw.append(layer)
    return raw


def pack_params(raw):
    """One-time packing into two lane-dense buffers.

    w_buf: (L, D, D)  weights transposed to (in, out), zero-padded to D=128-mult.
    v_buf: (rows_pad, D)  rows [2l]=gamma_l, [2l+1]=beta_l, [2*num_hidden]=final b.
    Hidden-layer biases are dropped: they cancel exactly under batch-mean
    subtraction in training-mode BatchNorm1d.
    """
    num_layers = len(raw)
    num_hidden = num_layers - 1
    in_dim = raw[0]["w"].shape[1]
    out_dims = [layer["w"].shape[0] for layer in raw]
    d_pad = _round_up(max([in_dim] + out_dims), 128)

    w_buf = jnp.zeros((num_layers, d_pad, d_pad), jnp.float32)
    for li, layer in enumerate(raw):
        w_t = jnp.transpose(layer["w"])                      # (in, out)
        w_buf = w_buf.at[li, : w_t.shape[0], : w_t.shape[1]].set(w_t)

    rows_pad = _round_up(2 * num_hidden + 1, 8)
    v_buf = jnp.zeros((rows_pad, d_pad), jnp.float32)
    for li, layer in enumerate(raw[:-1]):
        out = layer["w"].shape[0]
        v_buf = v_buf.at[2 * li, :out].set(layer["gamma"])
        v_buf = v_buf.at[2 * li + 1, :out].set(layer["beta"])
    v_buf = v_buf.at[2 * num_hidden, : out_dims[-1]].set(raw[-1]["b"])
    return w_buf, v_buf


# ----------------------------- reference ------------------------------------ #

def ref_forward(x, raw):
    """Pure-JAX reference with the ORIGINAL PyTorch semantics (incl. pre-BN
    bias and two-pass variance)."""
    h = x
    for layer in raw:
        y = h @ layer["w"].T + layer["b"]
        if layer["bn"]:
            mean = jnp.mean(y, axis=0, keepdims=True)
            var = jnp.mean((y - mean) ** 2, axis=0, keepdims=True)
            y = (y - mean) * jax.lax.rsqrt(var + 1e-5)
            y = y * layer["gamma"] + layer["beta"]
            y = jnp.maximum(y, 0.0)
        h = y
    return h


# ----------------------------- main ------------------------------------------ #

if __name__ == "__main__":
    key = jax.random.PRNGKey(0)
    key, kx = jax.random.split(key)

    BATCH = 8
    INPUT_DIM = 32
    HID_DIMS = [32, 32]
    NUM_CLS = 4

    x = jax.random.normal(kx, (BATCH, INPUT_DIM), jnp.float32)
    raw_params = init_raw_params(key, INPUT_DIM, NUM_CLS, HID_DIMS)
    w_buf, v_buf = pack_params(raw_params)

    logits = dnn_classifier_forward(x, w_buf, v_buf, num_cls=NUM_CLS)
    jax.block_until_ready(logits)

    ref = ref_forward(x, raw_params)
    assert logits.shape == (BATCH, NUM_CLS)
    assert jnp.allclose(logits, ref, atol=2e-4, rtol=2e-4), \
        float(jnp.max(jnp.abs(logits - ref)))

    print("KERNEL_OK")
</pallas_src>

<mosaic_0001>
module attributes {stable_mosaic.version = 11 : i64} {
  func.func @kernel(%arg0: memref<8x32xf32, #tpu.memory_space<vmem>>, %arg1: memref<3x128x128xf32, #tpu.memory_space<vmem>>, %arg2: memref<8x128xf32, #tpu.memory_space<vmem>>, %arg3: memref<8x128xf32, #tpu.memory_space<vmem>>) attributes {dimension_semantics = [], scalar_prefetch = 0 : i64, scratch_operands = 0 : i64, tpu.core_type = #tpu.core_type<tc>} {
    %c0 = arith.constant 0 : index
    %c0_0 = arith.constant 0 : index
    %0 = vector.load %arg0[%c0, %c0_0] : memref<8x32xf32, #tpu.memory_space<vmem>>, vector<8x32xf32>
    %c0_1 = arith.constant 0 : index
    %c0_2 = arith.constant 0 : index
    %c0_3 = arith.constant 0 : index
    %1 = vector.load %arg1[%c0_1, %c0_2, %c0_3] : memref<3x128x128xf32, #tpu.memory_space<vmem>>, vector<1x128x128xf32>
    %2 = vector.shape_cast %1 : vector<1x128x128xf32> to vector<128x128xf32>
    %3 = vector.extract_strided_slice %2 {offsets = [0, 0], sizes = [32, 128], strides = [1, 1]} : vector<128x128xf32> to vector<32x128xf32>
    %cst = arith.constant dense<0.000000e+00> : vector<8x128xf32>
    %4 = tpu.matmul %0, %3, %cst {dimension_numbers = #tpu.dot_dimension_numbers<[1], [0], [0], [1], [0, 0, 1, 1], [], []>} : vector<8x32xf32>, vector<32x128xf32>, vector<8x128xf32> -> vector<8x128xf32>
    %cst_4 = arith.constant dense<0.000000e+00> : vector<128xf32>
    %5 = vector.multi_reduction <add>, %4, %cst_4 [0] : vector<8x128xf32> to vector<128xf32>
    %6 = vector.shape_cast %5 : vector<128xf32> to vector<1x128xf32>
    %cst_5 = arith.constant 1.250000e-01 : f32
    %7 = vector.broadcast %cst_5 : f32 to vector<1x128xf32>
    %8 = arith.mulf %6, %7 : vector<1x128xf32>
    %9 = arith.mulf %4, %4 : vector<8x128xf32>
    %cst_6 = arith.constant dense<0.000000e+00> : vector<128xf32>
    %10 = vector.multi_reduction <add>, %9, %cst_6 [0] : vector<8x128xf32> to vector<128xf32>
    %11 = vector.shape_cast %10 : vector<128xf32> to vector<1x128xf32>
    %cst_7 = arith.constant 1.250000e-01 : f32
    %12 = vector.broadcast %cst_7 : f32 to vector<1x128xf32>
    %13 = arith.mulf %11, %12 : vector<1x128xf32>
    %14 = arith.mulf %8, %8 : vector<1x128xf32>
    %15 = arith.subf %13, %14 : vector<1x128xf32>
    %c0_8 = arith.constant 0 : index
    %c0_9 = arith.constant 0 : index
    %16 = vector.load %arg2[%c0_8, %c0_9] : memref<8x128xf32, #tpu.memory_space<vmem>>, vector<1x128xf32>
    %c1 = arith.constant 1 : index
    %c0_10 = arith.constant 0 : index
    %17 = vector.load %arg2[%c1, %c0_10] : memref<8x128xf32, #tpu.memory_space<vmem>>, vector<1x128xf32>
    %cst_11 = arith.constant 9.99999974E-6 : f32
    %18 = vector.broadcast %cst_11 : f32 to vector<1x128xf32>
    %19 = arith.addf %15, %18 : vector<1x128xf32>
    %20 = math.rsqrt %19 : vector<1x128xf32>
    %21 = arith.mulf %16, %20 : vector<1x128xf32>
    %22 = arith.mulf %8, %21 : vector<1x128xf32>
    %23 = arith.subf %17, %22 : vector<1x128xf32>
    %24 = vector.broadcast %21 : vector<1x128xf32> to vector<8x128xf32>
    %25 = arith.mulf %4, %24 : vector<8x128xf32>
    %26 = vector.broadcast %23 : vector<1x128xf32> to vector<8x128xf32>
    %27 = arith.addf %25, %26 : vector<8x128xf32>
    %cst_12 = arith.constant 0.000000e+00 : f32
    %28 = vector.broadcast %cst_12 : f32 to vector<8x128xf32>
    %29 = arith.maximumf %27, %28 : vector<8x128xf32>
    %c1_13 = arith.constant 1 : index
    %c0_14 = arith.constant 0 : index
    %c0_15 = arith.constant 0 : index
    %30 = vector.load %arg1[%c1_13, %c0_14, %c0_15] : memref<3x128x128xf32, #tpu.memory_space<vmem>>, vector<1x128x128xf32>
    %31 = vector.shape_cast %30 : vector<1x128x128xf32> to vector<128x128xf32>
    %cst_16 = arith.constant dense<0.000000e+00> : vector<8x128xf32>
    %32 = tpu.matmul %29, %31, %cst_16 {dimension_numbers = #tpu.dot_dimension_numbers<[1], [0], [0], [1], [0, 0, 1, 1], [], []>} : vector<8x128xf32>, vector<128x128xf32>, vector<8x128xf32> -> vector<8x128xf32>
    %cst_17 = arith.constant dense<0.000000e+00> : vector<128xf32>
    %33 = vector.multi_reduction <add>, %32, %cst_17 [0] : vector<8x128xf32> to vector<128xf32>
    %34 = vector.shape_cast %33 : vector<128xf32> to vector<1x128xf32>
    %cst_18 = arith.constant 1.250000e-01 : f32
    %35 = vector.broadcast %cst_18 : f32 to vector<1x128xf32>
    %36 = arith.mulf %34, %35 : vector<1x128xf32>
    %37 = arith.mulf %32, %32 : vector<8x128xf32>
    %cst_19 = arith.constant dense<0.000000e+00> : vector<128xf32>
    %38 = vector.multi_reduction <add>, %37, %cst_19 [0] : vector<8x128xf32> to vector<128xf32>
    %39 = vector.shape_cast %38 : vector<128xf32> to vector<1x128xf32>
    %cst_20 = arith.constant 1.250000e-01 : f32
    %40 = vector.broadcast %cst_20 : f32 to vector<1x128xf32>
    %41 = arith.mulf %39, %40 : vector<1x128xf32>
    %42 = arith.mulf %36, %36 : vector<1x128xf32>
    %43 = arith.subf %41, %42 : vector<1x128xf32>
    %c2 = arith.constant 2 : index
    %c0_21 = arith.constant 0 : index
    %44 = vector.load %arg2[%c2, %c0_21] : memref<8x128xf32, #tpu.memory_space<vmem>>, vector<1x128xf32>
    %c3 = arith.constant 3 : index
    %c0_22 = arith.constant 0 : index
    %45 = vector.load %arg2[%c3, %c0_22] : memref<8x128xf32, #tpu.memory_space<vmem>>, vector<1x128xf32>
    %cst_23 = arith.constant 9.99999974E-6 : f32
    %46 = vector.broadcast %cst_23 : f32 to vector<1x128xf32>
    %47 = arith.addf %43, %46 : vector<1x128xf32>
    %48 = math.rsqrt %47 : vector<1x128xf32>
    %49 = arith.mulf %44, %48 : vector<1x128xf32>
    %50 = arith.mulf %36, %49 : vector<1x128xf32>
    %51 = arith.subf %45, %50 : vector<1x128xf32>
    %52 = vector.broadcast %49 : vector<1x128xf32> to vector<8x128xf32>
    %53 = arith.mulf %32, %52 : vector<8x128xf32>
    %54 = vector.broadcast %51 : vector<1x128xf32> to vector<8x128xf32>
    %55 = arith.addf %53, %54 : vector<8x128xf32>
    %cst_24 = arith.constant 0.000000e+00 : f32
    %56 = vector.broadcast %cst_24 : f32 to vector<8x128xf32>
    %57 = arith.maximumf %55, %56 : vector<8x128xf32>
    %c2_25 = arith.constant 2 : index
    %c0_26 = arith.constant 0 : index
    %c0_27 = arith.constant 0 : index
    %58 = vector.load %arg1[%c2_25, %c0_26, %c0_27] : memref<3x128x128xf32, #tpu.memory_space<vmem>>, vector<1x128x128xf32>
    %59 = vector.shape_cast %58 : vector<1x128x128xf32> to vector<128x128xf32>
    %cst_28 = arith.constant dense<0.000000e+00> : vector<8x128xf32>
    %60 = tpu.matmul %57, %59, %cst_28 {dimension_numbers = #tpu.dot_dimension_numbers<[1], [0], [0], [1], [0, 0, 1, 1], [], []>} : vector<8x128xf32>, vector<128x128xf32>, vector<8x128xf32> -> vector<8x128xf32>
    %c4 = arith.constant 4 : index
    %c0_29 = arith.constant 0 : index
    %61 = vector.load %arg2[%c4, %c0_29] : memref<8x128xf32, #tpu.memory_space<vmem>>, vector<1x128xf32>
    %62 = vector.broadcast %61 : vector<1x128xf32> to vector<8x128xf32>
    %63 = arith.addf %60, %62 : vector<8x128xf32>
    %c0_30 = arith.constant 0 : index
    %c0_31 = arith.constant 0 : index
    %64 = vector.load %arg3[%c0_30, %c0_31] : memref<8x128xf32, #tpu.memory_space<vmem>>, vector<8x128xf32>
    tpu.vector_store %arg3[%c0_30, %c0_31], %63 {strides = array<i32>} : memref<8x128xf32, #tpu.memory_space<vmem>>, vector<8x128xf32>,
    return
  }
}

</mosaic_0001>

<bundles_post_ra>
// kernel: dnn_classifier_forward.1
= control target key start
LH: loop header
LB: loop body
LE: loop exit
PB: predicated region body
PF: predicated region fallthrough
CT: control target
= control target key end

     0   :  { %8 = vsyncpa [#allocation3], 0  ;;  %s738_s0 = inlined_call_operand.hbm [shape: f32[8,32], index: 0, kind: input, shape index: {}]   ;;  %s739_s1 = inlined_call_operand.hbm [shape: f32[3,128,128], index: 1, kind: input, shape index: {}]   ;;  %s740_s2 = inlined_call_operand.hbm [shape: f32[8,128], index: 2, kind: input, shape index: {}]   ;;  %s741_s3 = inlined_call_operand.vmem [shape: f32[8,128], index: 3, kind: output, shape index: {}]  }
   0x1   :  { %9 = vsyncpa [#allocation5], 0  ;;  %s644_s12 = smov [#allocation4]   ;;  %s574_s16 = scalar_lea.hbm %s739_s1, 6144 }
   0x2   :  { %s25_s13 = sshll.u32 %s644_s12, 4  ;;  %p575_p0 = scmp.ne.s32.totalorder %s739_s1, %s574_s16  ;;  %s26_s13 = int_to_ptr.vmem [resolvable:$true] %s25_s13 }
   0x3   :  { %p578_p1 = scmp.lt.u32.totalorder %s574_s16, %s739_s1 }
   0x5   :  { %p580_p2 = pnand %p578_p1, %p575_p0 }
   0x7   :  { %583 = shalt.err (!%p580_p2)
}
   0x8   :  { %s584_s21 = scalar_lea.vmem %s26_s13, 6144  ;;  %p589_p4 = scmp.lt.s32.totalorder %s26_s13, %s26_s13 }
   0x9   :  { %p585_p3 = scmp.ne.s32.totalorder %s26_s13, %s584_s21  ;;  %p590_p5 = scmp.lt.s32.totalorder %s584_s21, %s584_s21 }
   0xb   :  { %p591_p6 = por %p590_p5, %p589_p4 }
   0xd   :  { %p592_p7 = pnand %p591_p6, %p585_p3 }
   0xf   :  { %595 = shalt.err (!%p592_p7)
}
  0x10   :  { %s645_s22 = smov 128   ;;  %s646_s23 = smov 8  }
  0x11   :  { %31 = dma.hbm_to_vmem [thread:$0]  %s739_s1, 6144, %s26_s13, [#allocation5], %s645_s22, %s645_s22, %s646_s23  }
  0x12   :  { %s647_s26 = smov [#allocation2]   ;;  %s648_s28 = smov [#allocation6]  }
  0x13   :  { %s16_s27 = sshll.u32 %s647_s26, 4  ;;  %s38_s29 = sshll.u32 %s648_s28, 4  ;;  %s17_s27 = int_to_ptr.vmem [resolvable:$true] %s16_s27  ;;  %s39_s29 = int_to_ptr.vmem [resolvable:$true] %s38_s29 }
  0x14   :  { %s596_s5 = scalar_lea.hbm %s738_s0, 128 }
  0x15   :  { %p597_p8 = scmp.ne.s32.totalorder %s738_s0, %s596_s5  ;;  %p600_p9 = scmp.lt.u32.totalorder %s596_s5, %s738_s0 }
  0x17   :  { %p602_p10 = pnand %p600_p9, %p597_p8 }
  0x19   :  { %605 = shalt.err (!%p602_p10)
}
  0x1a   :  { %s606_s1 = scalar_lea.vmem %s17_s27, 128  ;;  %p611_p12 = scmp.lt.s32.totalorder %s17_s27, %s17_s27 }
  0x1b   :  { %p607_p11 = scmp.ne.s32.totalorder %s17_s27, %s606_s1  ;;  %p612_p13 = scmp.lt.s32.totalorder %s606_s1, %s606_s1 }
  0x1d   :  { %p613_p0 = por %p612_p13, %p611_p12 }
  0x1f   :  { %p614_p1 = pnand %p613_p0, %p607_p11 }
  0x21   :  { %617 = shalt.err (!%p614_p1)
}
  0x22   :  { %19 = dma.hbm_to_vmem [thread:$0]  %s738_s0, 128, %s17_s27, [#allocation3]  }
  0x23   :  { %s618_s14 = scalar_lea.hbm %s740_s2, 128 }
  0x24   :  { %p619_p2 = scmp.ne.s32.totalorder %s740_s2, %s618_s14  ;;  %p622_p3 = scmp.lt.u32.totalorder %s618_s14, %s740_s2 }
  0x26   :  { %p624_p4 = pnand %p622_p3, %p619_p2 }
  0x28   :  { %627 = shalt.err (!%p624_p4)
}
  0x29   :  { %s628_s19 = scalar_lea.vmem %s39_s29, 128  ;;  %p633_p6 = scmp.lt.s32.totalorder %s39_s29, %s39_s29 }
  0x2a   :  { %p629_p5 = scmp.ne.s32.totalorder %s39_s29, %s628_s19  ;;  %p634_p7 = scmp.lt.s32.totalorder %s628_s19, %s628_s19 }
  0x2c   :  { %p635_p8 = por %p634_p7, %p633_p6 }
  0x2e   :  { %p636_p9 = pnand %p635_p8, %p629_p5 }
  0x30   :  { %639 = shalt.err (!%p636_p9)
}
  0x31   :  { %41 = dma.hbm_to_vmem [thread:$0]  %s740_s2, 128, %s39_s29, [#allocation5]  }
  0x32   :  { %640 = dma.done.wait [#allocation3], 128  }
  0x33   :  { %641 = vsyncadd [#allocation3], 4294967168 }
  0x34   :  { %642 = dma.done.wait [#allocation5], 6272  }
  0x35   :  { %643 = vsyncadd [#allocation5], 4294961024  ;;  %v649_v0 = vmov 0.0|0.0   ;;  %vm650_vm0 = vmmov 0   ;;  %v651_v1 = vmov 0.0   ;;  %v52_v2 = vld [vmem:[#allocation4] sm:$0xff]  ;;  %v154_v53 = vlaneseq }
  0x36   :  { %508 = vmatprep.subr.bf16.mxu0 %v649_v0  ;;  %435 = vmatprep.mubr.msk.f32.mxu0 %vm650_vm0, %v651_v1  ;;  %v53_v3 = vld [vmem:[#allocation4 + $0x8] sm:$0xff]  ;;  %v54_v4 = vld [vmem:[#allocation4 + $0x10] sm:$0xff]  ;;  %v55_v6 = vld [vmem:[#allocation4 + $0x18] sm:$0xff]  ;;  %vm56_vm1 = vcmask 261120  }
  0x37   :  { %514 = vmatprep.subr.bf16.mxu1 %v649_v0  ;;  %470 = vmatprep.mubr.msk.f32.mxu1 %vm650_vm0, %v651_v1  ;;  %v509_v5 = vpack.c.bf16 %v53_v3, %v52_v2  ;;  %v512_v7 = vpack.c.bf16 %v55_v6, %v54_v4  ;;  %v51_v8 = vld [vmem:[#allocation2] sm:$0xff]  ;;  %v166_v9 = vld [vmem:[#allocation4 + $0x80] sm:$0xff]  ;;  %v167_v10 = vld [vmem:[#allocation4 + $0x88] sm:$0xff]  ;;  %v155_v54 = vshrl.u32 %v154_v53, 7 }
  0x38   :  { %v515_v11 = vpack.c.bf16 %v167_v10, %v166_v9  ;;  %v168_v12 = vld [vmem:[#allocation4 + $0x90] sm:$0xff]  ;;  %v169_v13 = vld [vmem:[#allocation4 + $0x98] sm:$0xff]  ;;  %v170_v15 = vld [vmem:[#allocation4 + $0xa0] sm:$0xff] }
  0x39   :  { %510 = vmatpush3.bf16.msra.mxu0 %v509_v5  ;;  %v518_v14 = vpack.c.bf16 %v169_v13, %v168_v12  ;;  %v171_v16 = vld [vmem:[#allocation4 + $0xa8] sm:$0xff]  ;;  %v172_v18 = vld [vmem:[#allocation4 + $0xb0] sm:$0xff]  ;;  %v173_v19 = vld [vmem:[#allocation4 + $0xb8] sm:$0xff]  ;;  %v722_v56 = vsub.s32 0, %v155_v54 }
  0x3a   :  { %511 = vmatprep.subr.bf16.mxu0 %v649_v0  ;;  %516 = vmatpush3.bf16.msra.mxu1 %v515_v11  ;;  %v521_v17 = vpack.c.bf16 %v171_v16, %v170_v15  ;;  %v524_v20 = vpack.c.bf16 %v173_v19, %v172_v18  ;;  %v174_v21 = vld [vmem:[#allocation4 + $0xc0] sm:$0xff]  ;;  %v175_v22 = vld [vmem:[#allocation4 + $0xc8] sm:$0xff]  ;;  %v176_v24 = vld [vmem:[#allocation4 + $0xd0] sm:$0xff] }
  0x3b   :  { %517 = vmatprep.subr.bf16.mxu1 %v649_v0  ;;  %v527_v23 = vpack.c.bf16 %v175_v22, %v174_v21  ;;  %v177_v25 = vld [vmem:[#allocation4 + $0xd8] sm:$0xff]  ;;  %v178_v27 = vld [vmem:[#allocation4 + $0xe0] sm:$0xff]  ;;  %v179_v28 = vld [vmem:[#allocation4 + $0xe8] sm:$0xff] }
  0x3c   :  { %v530_v26 = vpack.c.bf16 %v177_v25, %v176_v24  ;;  %v533_v29 = vpack.c.bf16 %v179_v28, %v178_v27  ;;  %v180_v30 = vld [vmem:[#allocation4 + $0xf0] sm:$0xff]  ;;  %v181_v31 = vld [vmem:[#allocation4 + $0xf8] sm:$0xff]  ;;  %v147_v55 = vld [vmem:[#allocation6] sm:$0x1] }
  0x3d   :  { %513 = vmatpush3.bf16.msra.mxu0 %v512_v7  ;;  %v536_v32 = vpack.c.bf16 %v181_v31, %v180_v30  ;;  %v148_v59 = vld [vmem:[#allocation6 + $0x1] sm:$0x1]  ;;  %v289_v5 = vld [vmem:[#allocation4 + $0x108] sm:$0xff]  ;;  %v290_v7 = vld [vmem:[#allocation4 + $0x110] sm:$0xff] }
  0x3e   :  { %538 = vmatprep.subr.bf16.mxu0 %v649_v0  ;;  %519 = vmatpush3.bf16.msra.mxu1 %v518_v14  ;;  %v288_v4 = vld [vmem:[#allocation4 + $0x100] sm:$0xff]  ;;  %v293_v11 = vld [vmem:[#allocation4 + $0x128] sm:$0xff]  ;;  %v294_v13 = vld [vmem:[#allocation4 + $0x130] sm:$0xff] }
  0x3f   :  { %520 = vmatprep.subr.bf16.mxu1 %v649_v0  ;;  %v539_v6 = vpack.c.bf16 %v289_v5, %v288_v4  ;;  %v292_v10 = vld [vmem:[#allocation4 + $0x120] sm:$0xff]  ;;  %v295_v14 = vld [vmem:[#allocation4 + $0x138] sm:$0xff]  ;;  %v298_v19 = vld [vmem:[#allocation4 + $0x150] sm:$0xff] }
  0x40   :  { %436 = vmatmul.mubr.msk.f32.vlgmr.msra.gmra.mrb[0].mxu0 %vm56_vm1, %v51_v8  ;;  %v291_v8 = vld [vmem:[#allocation4 + $0x118] sm:$0xff]  ;;  %v545_v12 = vpack.c.bf16 %v293_v11, %v292_v10  ;;  %v548_v15 = vpack.c.bf16 %v295_v14, %v294_v13  ;;  %v296_v16 = vld [vmem:[#allocation4 + $0x140] sm:$0xff]  ;;  %v302_v25 = vld [vmem:[#allocation4 + $0x170] sm:$0xff] }
  0x41   :  { %505 = vmatprep.mubr.msk.f32.mxu0 %vm650_vm0, %v651_v1  ;;  %540 = vmatpush3.bf16.msra.mxu0 %v539_v6  ;;  %v542_v9 = vpack.c.bf16 %v291_v8, %v290_v7  ;;  %v300_v22 = vld [vmem:[#allocation4 + $0x160] sm:$0xff] }
  0x42   :  { %522 = vmatpush3.bf16.msra.mxu1 %v521_v17  ;;  %541 = vmatprep.subr.bf16.mxu0 %v649_v0  ;;  %v297_v17 = vld [vmem:[#allocation4 + $0x148] sm:$0xff] }
  0x43   :  { %523 = vmatprep.subr.bf16.mxu1 %v649_v0  ;;  %v551_v18 = vpack.c.bf16 %v297_v17, %v296_v16 }
  0x45   :  { %543 = vmatpush3.bf16.msra.mxu0 %v542_v9 }
  0x46   :  { %525 = vmatpush3.bf16.msra.mxu1 %v524_v20  ;;  %544 = vmatprep.subr.bf16.mxu0 %v649_v0  ;;  %v299_v20 = vld [vmem:[#allocation4 + $0x158] sm:$0xff] }
  0x47   :  { %526 = vmatprep.subr.bf16.mxu1 %v649_v0  ;;  %v554_v21 = vpack.c.bf16 %v299_v20, %v298_v19 }
  0x49   :  { %546 = vmatpush3.bf16.msra.mxu0 %v545_v12 }
  0x4a   :  { %528 = vmatpush3.bf16.msra.mxu1 %v527_v23  ;;  %547 = vmatprep.subr.bf16.mxu0 %v649_v0  ;;  %v301_v23 = vld [vmem:[#allocation4 + $0x168] sm:$0xff] }
  0x4b   :  { %529 = vmatprep.subr.bf16.mxu1 %v649_v0  ;;  %v557_v24 = vpack.c.bf16 %v301_v23, %v300_v22 }
  0x4d   :  { %549 = vmatpush3.bf16.msra.mxu0 %v548_v15 }
  0x4e   :  { %531 = vmatpush3.bf16.msra.mxu1 %v530_v26  ;;  %550 = vmatprep.subr.bf16.mxu0 %v649_v0  ;;  %v303_v26 = vld [vmem:[#allocation4 + $0x178] sm:$0xff] }
  0x4f   :  { %532 = vmatprep.subr.bf16.mxu1 %v649_v0  ;;  %v560_v27 = vpack.c.bf16 %v303_v26, %v302_v25 }
  0x51   :  { %552 = vmatpush3.bf16.msra.mxu0 %v551_v18 }
  0x52   :  { %534 = vmatpush3.bf16.msra.mxu1 %v533_v29  ;;  %553 = vmatprep.subr.bf16.mxu0 %v649_v0 }
  0x53   :  { %535 = vmatprep.subr.bf16.mxu1 %v649_v0 }
  0x55   :  { %555 = vmatpush3.bf16.msra.mxu0 %v554_v21 }
  0x56   :  { %537 = vmatpush3.bf16.msra.mxu1 %v536_v32  ;;  %556 = vmatprep.subr.bf16.mxu0 %v649_v0 }
  0x59   :  { %558 = vmatpush3.bf16.msra.mxu0 %v557_v24 }
  0x5a   :  { %559 = vmatprep.subr.bf16.mxu0 %v649_v0 }
  0x5d   :  { %561 = vmatpush3.bf16.msra.mxu0 %v560_v27 }
 0x113   :  { %v126_v33 = vpop.f32.mrb[0].mxu0 }
 0x114   :  { %v130_v34 = vrot.slane %v126_v33, 4  ;;  %v137_v35 = vmul.f32 %v126_v33, %v126_v33  ;;  %v437_v36 = vpop.f32.mrb[1].mxu0 }
 0x116   :  { %v131_v37 = vadd.f32 %v130_v34, %v126_v33  ;;  %v138_v38 = vrot.slane %v137_v35, 4 }
 0x118   :  { %v132_v39 = vrot.slane %v131_v37, 2  ;;  %v139_v40 = vadd.f32 %v138_v38, %v137_v35 }
 0x11a   :  { %v133_v41 = vadd.f32 %v132_v39, %v131_v37  ;;  %v140_v42 = vrot.slane %v139_v40, 2 }
 0x11c   :  { %v134_v43 = vrot.slane %v133_v41, 1  ;;  %v141_v44 = vadd.f32 %v140_v42, %v139_v40 }
 0x11e   :  { %v135_v45 = vadd.f32 %v134_v43, %v133_v41  ;;  %v142_v46 = vrot.slane %v141_v44, 1 }
 0x120   :  { %v136_v47 = vmul.f32 0.125, %v135_v45  ;;  %v143_v48 = vadd.f32 %v142_v46, %v141_v44 }
 0x122   :  { %v144_v49 = vmul.f32 0.125, %v143_v48  ;;  %v145_v50 = vmul.f32 %v136_v47, %v136_v47 }
 0x124   :  { %v146_v51 = vsub.f32 %v144_v49, %v145_v50  ;;  %v270_v50 = vld [vmem:[#allocation6 + $0x3] sm:$0x1] }
 0x126   :  { %v149_v52 = vadd.f32 1e-05, %v146_v51 }
 0x128   :  { %570 = vrsqrt.f32 %v149_v52 }
 0x132   :  { %v571_v57 = vpop.eup %570 }
 0x133   :  { %v151_v58 = vmul.f32 %v571_v57, %v147_v55 }
 0x135   :  { %v157_v60 = vrot.slane %v151_v58, %v722_v56  ;;  %v152_v61 = vmul.f32 %v151_v58, %v136_v47  ;;  %v269_v47 = vld [vmem:[#allocation6 + $0x2] sm:$0x1] }
 0x137   :  { %v153_v62 = vsub.f32 %v148_v59, %v152_v61  ;;  %v158_v63 = vmul.f32 %v157_v60, %v126_v33  ;;  %v387_v59 = vld [vmem:[#allocation6 + $0x4] ss:$0 sm:$0xff] }
 0x139   :  { %v162_v1 = vrot.slane %v153_v62, %v722_v56 }
 0x13b   :  { %v163_v2 = vadd.f32 %v162_v1, %v158_v63 }
 0x13d   :  { %v164_v3 = vmax.f32 %v163_v2, 0.0 }
 0x13f   :  { %471 = vmatmul.mubr.f32.vlgmr.msra.gmra.mrb[0].mxu1 %v164_v3 }
 0x212   :  { %v248_v28 = vpop.f32.mrb[0].mxu1 }
 0x213   :  { %v252_v29 = vrot.slane %v248_v28, 4  ;;  %v259_v30 = vmul.f32 %v248_v28, %v248_v28  ;;  %v472_v31 = vpop.f32.mrb[1].mxu1 }
 0x215   :  { %v253_v32 = vadd.f32 %v252_v29, %v248_v28  ;;  %v260_v33 = vrot.slane %v259_v30, 4 }
 0x217   :  { %v254_v34 = vrot.slane %v253_v32, 2  ;;  %v261_v35 = vadd.f32 %v260_v33, %v259_v30 }
 0x219   :  { %v255_v36 = vadd.f32 %v254_v34, %v253_v32  ;;  %v262_v37 = vrot.slane %v261_v35, 2 }
 0x21b   :  { %v256_v38 = vrot.slane %v255_v36, 1  ;;  %v263_v39 = vadd.f32 %v262_v37, %v261_v35 }
 0x21d   :  { %v257_v40 = vadd.f32 %v256_v38, %v255_v36  ;;  %v264_v41 = vrot.slane %v263_v39, 1 }
 0x21f   :  { %v258_v42 = vmul.f32 0.125, %v257_v40  ;;  %v265_v0 = vadd.f32 %v264_v41, %v263_v39 }
 0x221   :  { %v266_v43 = vmul.f32 0.125, %v265_v0  ;;  %v267_v44 = vmul.f32 %v258_v42, %v258_v42 }
 0x223   :  { %v268_v45 = vsub.f32 %v266_v43, %v267_v44 }
 0x225   :  { %v271_v46 = vadd.f32 1e-05, %v268_v45 }
 0x227   :  { %572 = vrsqrt.f32 %v271_v46 }
 0x231   :  { %v573_v48 = vpop.eup %572 }
 0x232   :  { %v273_v49 = vmul.f32 %v573_v48, %v269_v47 }
 0x234   :  { %v274_v51 = vmul.f32 %v273_v49, %v258_v42  ;;  %v279_v52 = vrot.slane %v273_v49, %v722_v56 }
 0x236   :  { %v275_v53 = vsub.f32 %v270_v50, %v274_v51  ;;  %v280_v54 = vmul.f32 %v279_v52, %v248_v28 }
 0x238   :  { %v284_v55 = vrot.slane %v275_v53, %v722_v56 }
 0x23a   :  { %v285_v57 = vadd.f32 %v284_v55, %v280_v54 }
 0x23c   :  { %v286_v58 = vmax.f32 %v285_v57, 0.0 }
 0x23e   :  { %506 = vmatmul.mubr.f32.vlgmr.msra.gmra.mrb[2].mxu0 %v286_v58 }
 0x311   :  { %v375_v60 = vpop.f32.mrb[2].mxu0 }
 0x312   :  { %v376_v61 = vadd.f32 %v387_v59, %v375_v60  ;;  %v507_v62 = vpop.f32.mrb[3].mxu0 }
 0x314   :  { %379 = vst [vmem:[%s741_s3] sm:$0xff] %v376_v61 }
 0x315   :  { %384 = vsyncpa [#allocation3], 1 }
 0x316   :  { %385 = vsyncpa [#allocation5], 1 }

</bundles_post_ra>
